<compile_context>
chip_gen: v7x
topology: tpu7x:2x2x1
jax: 0.10.0
libtpu: 0.0.40
codegen_flags: <defaults>
</compile_context>

<pallas_src>
import functools

import jax
import jax.numpy as jnp
from jax import lax
from jax.experimental import pallas as pl
from jax.experimental.pallas import tpu as pltpu

_LANES = 128
_NUM_SHARDS = 2        # leading "parallel" grid axis (2 TCs on v7x; cheap serial loop elsewhere)
_CHUNK_ROWS = 1024     # in-kernel compute chunk (bounds vreg live ranges / VMEM temps)
_MIN_INNER_STEPS = 4   # aim for >= this many pipelined inner steps per shard


def _round_up(a, b):
    return ((a + b - 1) // b) * b


def _partial_sums(x, y, approx):
    # |log(x+1) - log(y+1)| == |log((x+1)/(y+1))|: one log per element (EUP slot).
    if approx:
        ratio = (x + 1.0) * pl.reciprocal(y + 1.0, approx=True)   # v7x VALU relief
    else:
        ratio = (x + 1.0) / (y + 1.0)
    mae_p = jnp.sum(jnp.abs(jnp.log(ratio)), axis=0)   # (8,128)
    d = y - x
    sq_p = jnp.sum(d * d, axis=0)                      # (8,128)
    yy_p = jnp.sum(y * y, axis=0)                      # (8,128)
    return mae_p, sq_p, yy_p


def _loss_kernel(xy_ref, acc_ref, *, tile_rows, chunk_rows, inner, rows_valid,
                 needs_mask, approx):
    shard = pl.program_id(0)
    step = pl.program_id(1)

    @pl.when(step == 0)
    def _():
        acc_ref[...] = jnp.zeros_like(acc_ref)

    n_chunks = tile_rows // chunk_rows
    t = chunk_rows // 8
    # Logical (unclamped) row offset of this step; the index_map clamps the DMA to
    # stay in bounds, and the mask below zeroes overhang / duplicated-block rows.
    base_row = (shard * inner + step) * tile_rows

    def body(c, carry):
        mae_a, sq_a, yy_a = carry
        off = pl.multiple_of(c * chunk_rows, chunk_rows)
        x = xy_ref[0, pl.ds(off, chunk_rows), :].astype(jnp.float32).reshape(t, 8, _LANES)
        y = xy_ref[1, pl.ds(off, chunk_rows), :].astype(jnp.float32).reshape(t, 8, _LANES)
        if needs_mask:
            r = (lax.broadcasted_iota(jnp.int32, (t, 8, 1), 0) * 8
                 + lax.broadcasted_iota(jnp.int32, (t, 8, 1), 1))
            valid = (r + (base_row + off)) < rows_valid
            x = jnp.where(valid, x, 0.0)   # log((0+1)/(0+1)) = 0, d = 0, y*y = 0
            y = jnp.where(valid, y, 0.0)
        mae_p, sq_p, yy_p = _partial_sums(x, y, approx)
        return mae_a + mae_p, sq_a + sq_p, yy_a + yy_p

    zero = jnp.zeros((8, _LANES), jnp.float32)
    mae_p, sq_p, yy_p = lax.fori_loop(0, n_chunks, body, (zero, zero, zero))

    acc_ref[0] += mae_p
    acc_ref[1] += sq_p
    acc_ref[2] += yy_p


def spectral_log_stft_magnitude_loss(output, target=None, *, tile_rows=4096,
                                     chunk_rows=_CHUNK_ROWS, approx_reciprocal=False):
    """Forward pass of Spectral_LogSTFTMagnitude_Loss (stft=True branch)."""
    # `target` is unused by the reference forward pass.
    del target
    # TODO(synk): stft=False branch (torch.stft -> complex magnitude) not implemented.
    # torch.split(output, split_size_or_sections=2, dim=0) yields SIZE-2 chunks, so the
    # module only unpacks cleanly when output.shape[0] == 4 (x = output[:2], y = output[2:]).
    assert output.shape[0] == 4, "dim 0 must be 4 (two size-2 chunks, torch.split semantics)"

    n = int(output.size) // 2                             # elements per half (for the mean)
    sub = {4: 8, 2: 16, 1: 32}.get(output.dtype.itemsize, 8)

    # Rows of 128 lanes per half; reshape is copy-free whenever n % 128 == 0.
    n128 = _round_up(n, _LANES)
    rows = max(n128 // _LANES, sub)
    n128 = rows * _LANES

    # Tile sizing: as large as possible (amortize per-step overhead), but capped so each
    # shard still gets >= _MIN_INNER_STEPS pipelined steps; dtype-sublane multiples.
    cap = _round_up(pl.cdiv(rows, _NUM_SHARDS * _MIN_INNER_STEPS), sub)
    tile_rows = max(sub, min(_round_up(tile_rows, sub), cap, _round_up(rows, sub)))
    chunk_rows = max(sub, min(_round_up(chunk_rows, sub), tile_rows))
    tile_rows = max(chunk_rows, (tile_rows // chunk_rows) * chunk_rows)   # multiple of chunk

    total_blocks = pl.cdiv(rows, tile_rows)
    num_shards = _NUM_SHARDS if total_blocks >= _NUM_SHARDS else 1
    inner = pl.cdiv(total_blocks, num_shards)
    last_blk = total_blocks - 1
    # Mask only when the last block overhangs `rows`, or a shard re-reads the clamped
    # last block; both contribute exactly zero under the in-kernel row mask.
    needs_mask = (total_blocks * tile_rows != rows) or (num_shards * inner != total_blocks)

    flat = output.reshape(2, n)                 # free: each size-2 chunk is contiguous
    if n128 != n:
        # Only for non-128-aligned element counts (rare); zero pad is neutral for all sums.
        flat = jnp.pad(flat, ((0, 0), (0, n128 - n)))
    stacked = flat.reshape(2, rows, _LANES)     # free reshape

    kernel = functools.partial(
        _loss_kernel, tile_rows=tile_rows, chunk_rows=chunk_rows, inner=inner,
        rows_valid=rows, needs_mask=needs_mask, approx=approx_reciprocal)

    partials = pl.pallas_call(
        kernel,
        out_shape=jax.ShapeDtypeStruct((num_shards, 3, 8, _LANES), jnp.float32),
        grid_spec=pltpu.PrefetchScalarGridSpec(
            num_scalar_prefetch=0,
            grid=(num_shards, inner),
            in_specs=[
                # One fused DMA per step covering both halves (x = ref[0], y = ref[1]).
                pl.BlockSpec(
                    (2, tile_rows, _LANES),
                    lambda c, i: (0, jnp.minimum(c * inner + i, last_blk), 0)),
            ],
            out_specs=pl.BlockSpec((None, 3, 8, _LANES), lambda c, i: (c, 0, 0, 0)),
        ),
        compiler_params=pltpu.CompilerParams(
            dimension_semantics=("parallel", "arbitrary")),
    )(stacked)

    sums = jnp.sum(partials, axis=(0, 2, 3))    # (3,) global sums
    mae = sums[0] / n
    sc = jnp.sqrt(sums[1]) / (jnp.sqrt(sums[2]) + 1e-10)
    # torch.norm(dim=None) ignores keepdim, so the PyTorch module returns a 0-dim scalar.
    return mae + sc


def _reference_loss(output):
    x = output[:2].astype(jnp.float32)
    y = output[2:4].astype(jnp.float32)
    mae = jnp.mean(jnp.abs(jnp.log(x + 1.0) - jnp.log(y + 1.0)))
    sc = jnp.linalg.norm((y - x).ravel()) / (jnp.linalg.norm(y.ravel()) + 1e-10)
    return mae + sc


if __name__ == "__main__":
    key = jax.random.PRNGKey(0)
    k1, k2, k3, k4 = jax.random.split(key, 4)

    # Canonical small case (128-aligned, unmasked fast path).
    output = jax.random.uniform(k1, (4, 4, 16, 16), dtype=jnp.float32)
    target = jax.random.uniform(k2, (4, 4, 16, 16), dtype=jnp.float32)  # unused by forward
    loss = jax.block_until_ready(spectral_log_stft_magnitude_loss(output, target))
    assert loss.shape == ()
    assert jnp.allclose(loss, _reference_loss(output), rtol=1e-5, atol=1e-5)

    # Overhanging last block + clamped duplicate block (masked path).
    out2 = jax.random.uniform(k3, (4, 5, 16, 16), dtype=jnp.float32)
    loss2 = jax.block_until_ready(spectral_log_stft_magnitude_loss(out2))
    assert jnp.allclose(loss2, _reference_loss(out2), rtol=1e-5, atol=1e-5)

    # Multi-chunk in-kernel fori_loop + masked overhang (still small shapes).
    out3 = jax.random.uniform(k4, (4, 35, 16, 16), dtype=jnp.float32)
    loss3 = jax.block_until_ready(spectral_log_stft_magnitude_loss(out3, chunk_rows=8))
    assert jnp.allclose(loss3, _reference_loss(out3), rtol=1e-5, atol=1e-5)

    print("KERNEL_OK")
</pallas_src>

<mosaic_0001>
module attributes {stable_mosaic.version = 11 : i64} {
  func.func @_loss_kernel(%arg0: i32, %arg1: i32, %arg2: memref<2x8x128xf32, #tpu.memory_space<vmem>>, %arg3: memref<1x3x8x128xf32, #tpu.memory_space<vmem>>) attributes {dimension_semantics = [#tpu.dimension_semantics<parallel>, #tpu.dimension_semantics<arbitrary>], iteration_bounds = array<i64: 2, 1>, scalar_prefetch = 0 : i64, scratch_operands = 0 : i64, tpu.core_type = #tpu.core_type<tc>, window_params = [{transform_indices = @transform_0, window_bounds = array<i64: 2, 8, 128>}, {transform_indices = @transform_1, window_bounds = array<i64: 1, 3, 8, 128>}]} {
    %c0_i32 = arith.constant 0 : i32
    %0 = arith.cmpi eq, %arg1, %c0_i32 : i32
    %1 = arith.extui %0 : i1 to i32
    %c0_i32_0 = arith.constant 0 : i32
    %2 = arith.cmpi ne, %1, %c0_i32_0 : i32
    scf.if %2 {
      %cst_32 = arith.constant 0.000000e+00 : f32
      %48 = vector.broadcast %cst_32 : f32 to vector<3x8x128xf32>
      %c0_33 = arith.constant 0 : index
      %c0_34 = arith.constant 0 : index
      %c0_35 = arith.constant 0 : index
      %c0_36 = arith.constant 0 : index
      %49 = vector.load %arg3[%c0_33, %c0_34, %c0_35, %c0_36] : memref<1x3x8x128xf32, #tpu.memory_space<vmem>>, vector<1x3x8x128xf32>
      %50 = vector.shape_cast %49 : vector<1x3x8x128xf32> to vector<3x8x128xf32>
      %51 = vector.shape_cast %48 : vector<3x8x128xf32> to vector<1x3x8x128xf32>
      tpu.vector_store %arg3[%c0_33, %c0_34, %c0_35, %c0_36], %51 {strides = array<i32>} : memref<1x3x8x128xf32, #tpu.memory_space<vmem>>, vector<1x3x8x128xf32>,
    } else {
    }
    %cst = arith.constant 0.000000e+00 : f32
    %3 = vector.broadcast %cst : f32 to vector<8x128xf32>
    %c0_i32_1 = arith.constant 0 : i32
    %c8_i32 = arith.constant 8 : i32
    %4 = arith.muli %c0_i32_1, %c8_i32 : i32
    %5 = tpu.assume_multiple %4, 8 : i32
    %c0 = arith.constant 0 : index
    %6 = arith.index_cast %5 : i32 to index
    %c0_2 = arith.constant 0 : index
    %7 = vector.load %arg2[%c0, %6, %c0_2] : memref<2x8x128xf32, #tpu.memory_space<vmem>>, vector<1x8x128xf32>
    %8 = vector.shape_cast %7 : vector<1x8x128xf32> to vector<8x128xf32>
    %9 = vector.shape_cast %8 : vector<8x128xf32> to vector<1x8x128xf32>
    %c1 = arith.constant 1 : index
    %10 = arith.index_cast %5 : i32 to index
    %c0_3 = arith.constant 0 : index
    %11 = vector.load %arg2[%c1, %10, %c0_3] : memref<2x8x128xf32, #tpu.memory_space<vmem>>, vector<1x8x128xf32>
    %12 = vector.shape_cast %11 : vector<1x8x128xf32> to vector<8x128xf32>
    %13 = vector.shape_cast %12 : vector<8x128xf32> to vector<1x8x128xf32>
    %cst_4 = arith.constant 1.000000e+00 : f32
    %14 = vector.broadcast %cst_4 : f32 to vector<1x8x128xf32>
    %15 = arith.addf %9, %14 : vector<1x8x128xf32>
    %cst_5 = arith.constant 1.000000e+00 : f32
    %16 = vector.broadcast %cst_5 : f32 to vector<1x8x128xf32>
    %17 = arith.addf %13, %16 : vector<1x8x128xf32>
    %18 = arith.divf %15, %17 : vector<1x8x128xf32>
    %19 = math.log %18 : vector<1x8x128xf32>
    %20 = math.absf %19 : vector<1x8x128xf32>
    %cst_6 = arith.constant dense<0.000000e+00> : vector<8x128xf32>
    %21 = vector.multi_reduction <add>, %20, %cst_6 [0] : vector<1x8x128xf32> to vector<8x128xf32>
    %22 = arith.subf %13, %9 : vector<1x8x128xf32>
    %23 = arith.mulf %22, %22 : vector<1x8x128xf32>
    %cst_7 = arith.constant dense<0.000000e+00> : vector<8x128xf32>
    %24 = vector.multi_reduction <add>, %23, %cst_7 [0] : vector<1x8x128xf32> to vector<8x128xf32>
    %25 = arith.mulf %13, %13 : vector<1x8x128xf32>
    %cst_8 = arith.constant dense<0.000000e+00> : vector<8x128xf32>
    %26 = vector.multi_reduction <add>, %25, %cst_8 [0] : vector<1x8x128xf32> to vector<8x128xf32>
    %27 = arith.addf %3, %21 : vector<8x128xf32>
    %28 = arith.addf %3, %24 : vector<8x128xf32>
    %29 = arith.addf %3, %26 : vector<8x128xf32>
    %c1_i32 = arith.constant 1 : i32
    %c0_9 = arith.constant 0 : index
    %c0_10 = arith.constant 0 : index
    %c0_11 = arith.constant 0 : index
    %c0_12 = arith.constant 0 : index
    %30 = vector.load %arg3[%c0_9, %c0_10, %c0_11, %c0_12] : memref<1x3x8x128xf32, #tpu.memory_space<vmem>>, vector<1x1x8x128xf32>
    %31 = vector.shape_cast %30 : vector<1x1x8x128xf32> to vector<8x128xf32>
    %32 = arith.addf %31, %27 : vector<8x128xf32>
    %c0_13 = arith.constant 0 : index
    %c0_14 = arith.constant 0 : index
    %c0_15 = arith.constant 0 : index
    %c0_16 = arith.constant 0 : index
    %33 = vector.load %arg3[%c0_13, %c0_14, %c0_15, %c0_16] : memref<1x3x8x128xf32, #tpu.memory_space<vmem>>, vector<1x1x8x128xf32>
    %34 = vector.shape_cast %33 : vector<1x1x8x128xf32> to vector<8x128xf32>
    %35 = vector.shape_cast %32 : vector<8x128xf32> to vector<1x1x8x128xf32>
    tpu.vector_store %arg3[%c0_13, %c0_14, %c0_15, %c0_16], %35 {strides = array<i32>} : memref<1x3x8x128xf32, #tpu.memory_space<vmem>>, vector<1x1x8x128xf32>,
    %c0_17 = arith.constant 0 : index
    %c1_18 = arith.constant 1 : index
    %c0_19 = arith.constant 0 : index
    %c0_20 = arith.constant 0 : index
    %36 = vector.load %arg3[%c0_17, %c1_18, %c0_19, %c0_20] : memref<1x3x8x128xf32, #tpu.memory_space<vmem>>, vector<1x1x8x128xf32>
    %37 = vector.shape_cast %36 : vector<1x1x8x128xf32> to vector<8x128xf32>
    %38 = arith.addf %37, %28 : vector<8x128xf32>
    %c0_21 = arith.constant 0 : index
    %c1_22 = arith.constant 1 : index
    %c0_23 = arith.constant 0 : index
    %c0_24 = arith.constant 0 : index
    %39 = vector.load %arg3[%c0_21, %c1_22, %c0_23, %c0_24] : memref<1x3x8x128xf32, #tpu.memory_space<vmem>>, vector<1x1x8x128xf32>
    %40 = vector.shape_cast %39 : vector<1x1x8x128xf32> to vector<8x128xf32>
    %41 = vector.shape_cast %38 : vector<8x128xf32> to vector<1x1x8x128xf32>
    tpu.vector_store %arg3[%c0_21, %c1_22, %c0_23, %c0_24], %41 {strides = array<i32>} : memref<1x3x8x128xf32, #tpu.memory_space<vmem>>, vector<1x1x8x128xf32>,
    %c0_25 = arith.constant 0 : index
    %c2 = arith.constant 2 : index
    %c0_26 = arith.constant 0 : index
    %c0_27 = arith.constant 0 : index
    %42 = vector.load %arg3[%c0_25, %c2, %c0_26, %c0_27] : memref<1x3x8x128xf32, #tpu.memory_space<vmem>>, vector<1x1x8x128xf32>
    %43 = vector.shape_cast %42 : vector<1x1x8x128xf32> to vector<8x128xf32>
    %44 = arith.addf %43, %29 : vector<8x128xf32>
    %c0_28 = arith.constant 0 : index
    %c2_29 = arith.constant 2 : index
    %c0_30 = arith.constant 0 : index
    %c0_31 = arith.constant 0 : index
    %45 = vector.load %arg3[%c0_28, %c2_29, %c0_30, %c0_31] : memref<1x3x8x128xf32, #tpu.memory_space<vmem>>, vector<1x1x8x128xf32>
    %46 = vector.shape_cast %45 : vector<1x1x8x128xf32> to vector<8x128xf32>
    %47 = vector.shape_cast %44 : vector<8x128xf32> to vector<1x1x8x128xf32>
    tpu.vector_store %arg3[%c0_28, %c2_29, %c0_30, %c0_31], %47 {strides = array<i32>} : memref<1x3x8x128xf32, #tpu.memory_space<vmem>>, vector<1x1x8x128xf32>,
    return
  }
  func.func @transform_0(%arg0: i32, %arg1: i32) -> (i32, i32, i32) {
    %c1_i32 = arith.constant 1 : i32
    %0 = arith.muli %arg0, %c1_i32 : i32
    %1 = arith.addi %0, %arg1 : i32
    %c1_i32_0 = arith.constant 1 : i32
    %2 = arith.minsi %1, %c1_i32_0 : i32
    %c0_i32 = arith.constant 0 : i32
    %c0_i32_1 = arith.constant 0 : i32
    %c0_i32_2 = arith.constant 0 : i32
    return %c0_i32, %2, %c0_i32_1 : i32, i32, i32
  }
  func.func @transform_1(%arg0: i32, %arg1: i32) -> (i32, i32, i32, i32) {
    %c0_i32 = arith.constant 0 : i32
    %c0_i32_0 = arith.constant 0 : i32
    %c0_i32_1 = arith.constant 0 : i32
    %c0_i32_2 = arith.constant 0 : i32
    return %arg0, %c0_i32, %c0_i32_0, %c0_i32_1 : i32, i32, i32, i32
  }
}

</mosaic_0001>

<bundles_post_ra>
// kernel: tpu_custom_call.1
= control target key start
LH: loop header
LB: loop body
LE: loop exit
PB: predicated region body
PF: predicated region fallthrough
CT: control target
= control target key end

     0   :  { %6 = vsyncpa [#allocation3], 0  ;;  %s769_s0 = inlined_call_operand.hbm [shape: f32[2,16,128], index: 0, kind: input, shape index: {}]   ;;  %s770_s1 = inlined_call_operand.hbm [shape: f32[2,3,8,128], index: 1, kind: output, shape index: {}]  }
   0x1   :  { %8 = vsyncpa [#allocation3 + $0x1], 0 }
   0x2   :  { %9 = vsyncpa [#allocation4], 0 }
   0x3   :  { %11 = vsyncpa [#allocation4 + $0x1], 0  ;;  %s561_s6 = smov 0   ;;  %s563_s7 = smov 0  }
   0x4   :  { %s565_s8 = smov 0   ;;  %s567_s9 = smov 0  }
   0x5   :  { %s569_s10 = smov 0   ;;  %s571_s11 = smov 0  }
   0x6   :  { %s573_s12 = smov 0   ;;  %s575_s13 = smov 0  }
   0x7   :  { %s577_s14 = smov 0  }
   0x8 LB: > { %s292_s15 = sadd.s32 4294967295, %s542_s14   ;;  %s293_s16 = sadd.s32 4294967294, %s542_s14   ;;  %s542_s14 = sphi %s577_s14, %s17_s14   ;;  %s538_s13 = sphi %s575_s13, %s788_s13   ;;  %s534_s12 = sphi %s573_s12, %s787_s12   ;;  %s530_s11 = sphi %s571_s11, %s786_s11   ;;  %s526_s10 = sphi %s569_s10, %s785_s10   ;;  %s522_s9 = sphi %s567_s9, %s784_s9   ;;  %s518_s8 = sphi %s565_s8, %s783_s8   ;;  %s514_s7 = sphi %s563_s7, %s782_s7   ;;  %s510_s6 = sphi %s561_s6, %s781_s6  }
   0x9   : > { %s29_s17 = sadd.s32 1, %s538_s13  ;;  %p34_p0 = scmp.lt.s32.totalorder %s538_s13, 1 }
   0xa   : > { %p31_p1 = scmp.ge.s32.totalorder %s29_s17, 2  ;;  %s42_s18 = sadd.s32 1, %s530_s11 }
   0xb   : > { %s610_s19 = scalar_select %p34_p0, %s538_s13, 1 }
   0xc   : > { %s790_s17 = smov (%p31_p1, %s29_s17), 0  ;;  %p49_p2 = scmp.ne.s32.totalorder %s530_s11, %s526_s10 }
   0xd   : > { %p50_p3 = scmp.eq.s32.totalorder %s542_s14, 0  ;;  %p37_p4 = scmp.lt.s32.totalorder %s790_s17, 1 }
   0xe   : > { %p55_p5 = scmp.ne.s32.totalorder %s526_s10, %s522_s9  ;;  %p56_p7 = scmp.eq.s32.totalorder %s292_s15, 0 }
   0xf   : > { %p619_p6 = por %p50_p3, %p49_p2  ;;  %s65_s23 = ssub.s32 %s538_s13, %s790_s17 }
  0x10   : > { %s38_s21 = scalar_select %p37_p4, %s790_s17, 1 }
  0x11   : > { %p624_p8 = por %p56_p7, %p55_p5  ;;  %p66_p9 = scmp.eq.s32.totalorder %s65_s23, 0 }
  0x12   : > { %s39_s24 = ssub.s32 %s610_s19, %s38_s21  ;;  %s68_s25 = sadd.s32 1, %s518_s8 }
  0x13   : > { %p40_p10 = scmp.eq.s32.totalorder %s39_s24, 0  ;;  %p78_p11 = scmp.ne.s32.totalorder %s518_s8, %s514_s7 }
  0x14   : > { %s633_s26 = scalar_select %p66_p9, %s518_s8, %s68_s25  }
  0x15   : > { %s636_s27 = scalar_select %p40_p10, %s530_s11, %s42_s18  }
  0x16   : > { %p79_p12 = scmp.eq.s32.totalorder %s292_s15, 1  ;;  %p84_p13 = scmp.ne.s32.totalorder %s514_s7, %s510_s6 }
  0x17   : > { %p85_p0 = scmp.eq.s32.totalorder %s293_s16, 1  ;;  %p322_p4 = scmp.lt.s32.totalorder %s542_s14, 2 }
  0x18   : > { %p642_p1 = por %p79_p12, %p78_p11  ;;  %s105_s30 = sand.u32 1, %s530_s11  }
  0x19   : > { %p647_p3 = por %p85_p0, %p84_p13  ;;  %s297_s2 = sshll.u32 %s610_s19, 7 }
  0x1a   : > { %s774_s28 = scalar_select %p642_p1, 1, 0 }
  0x1b   : > { %s775_s29 = scalar_select %p647_p3, 1, 0 }
  0x1c   : > { %s296_s3 = sshll.u32 %s105_s30, 4  ;;  %s657_s9 = scalar_lea.hbm %s769_s0, %s297_s2 }
  0x1d   : > { %s109_s15 = scalar_lea.vmem [#allocation2], %s296_s3  ;;  %p661_p5 = pnand %p322_p4, %p619_p6 }
  0x1e   : > { %s118_s16 = sshll.u32 %s109_s15, 4  ;;  %s668_s19 = scalar_lea.sflag [#allocation3], %s105_s30  ;;  %s665_s16 = int_to_ptr.vmem [resolvable:$true] %s118_s16 }
  0x1f   : > { %s406_s21 = scalar_lea.hbm %s657_s9, 256  ;;  %p408_p10 = pneg %p661_p5 }
  0x20   : > { %p407_p9 = scmp.ne.s32.totalorder %s657_s9, %s406_s21  ;;  %s411_s24 = scalar_lea.hbm %s769_s0, 512 }
  0x21   : > { %p412_p6 = scmp.lt.u32.totalorder %s657_s9, %s769_s0  ;;  %p413_p13 = scmp.lt.u32.totalorder %s411_s24, %s406_s21 }
  0x22   : > { %p409_p11 = pnand %p408_p10, %p407_p9  ;;  %p415_p4 = scmp.lt.u32.totalorder %s406_s21, %s657_s9 }
  0x23   : > { %p414_p0 = por %p413_p13, %p412_p6 }
  0x24   : > { %p410_p12 = pneg %p409_p11 }
  0x25   : > { %p416_p2 = por %p415_p4, %p414_p0 }
  0x27   : > { %p417_p7 = pnand %p416_p2, %p410_p12 }
  0x29   : > { %420 = shalt.err (!%p417_p7)
}
  0x2a   : > { %s421_s30 = scalar_lea.vmem %s665_s16, 256  ;;  %s544_s3 = smov [#allocation2]  }
  0x2b   : > { %p422_p9 = scmp.ne.s32.totalorder %s665_s16, %s421_s30  ;;  %s426_s4 = sshll.u32 %s544_s3, 4  ;;  %s427_s4 = int_to_ptr.vmem [resolvable:$false] %s426_s4 }
  0x2c   : > { %s428_s5 = scalar_lea.vmem %s427_s4, 512  ;;  %p429_p1 = scmp.lt.s32.totalorder %s665_s16, %s427_s4 }
  0x2d   : > { %p424_p11 = pnand %p422_p9, %p408_p10  ;;  %p430_p6 = scmp.lt.s32.totalorder %s428_s5, %s421_s30 }
  0x2f   : > { %p425_p3 = pneg %p424_p11  ;;  %p431_p13 = por %p430_p6, %p429_p1 }
  0x31   : > { %p432_p0 = pnand %p431_p13, %p425_p3 }
  0x33   : > { %435 = shalt.err (!%p432_p0)
}
  0x34   : > { %s545_s15 = smov 256   ;;  %s546_s21 = smov 128  }
  0x35   : > { %s547_s20 = smov 8   ;;  %p126_p2 = scmp.lt.s32.totalorder %s542_s14, 3 }
  0x36   : > { %317 = dma.hbm_to_vmem [thread:$0]  (!%p661_p5), %s657_s9, 256, %s665_s16, %s668_s19, %s545_s15, %s546_s21, %s547_s20  }
  0x37   : > { %p777_p7 = scmp.ge.s32.totalorder %s542_s14, 1 }
  0x39   : > { %p127_p10 = pnand %p777_p7, %p126_p2 }
  0x3a   : > { %s132_s23 = sand.u32 (!%p127_p10), 1, %s526_s10  }
  0x3b   : > { %130 = sbr.rel (%p127_p10) target bundleno = 113 (0x71), region = 24  ;;  %s299_s24 = sshll.u32 (!%p127_p10), %s132_s23, 4 }
  0x3c   : > { %s133_s25 = scalar_lea.sflag (!%p127_p10), [#allocation3], %s132_s23  ;;  %s136_s2 = scalar_lea.vmem (!%p127_p10), [#allocation2], %s299_s24 }
  0x42   : > { %501 = dma.done.wait (%p624_p8), %s133_s25, 256  }
  0x43   : > { %503 = vsyncadd (%p624_p8), %s133_s25, 4294967040  ;;  %s152_s30 = sand.u32 1, %s514_s7   ;;  %v165_v0 = vld [vmem:[%s136_s2] sm:$0xff]  ;;  %v300_v1 = vld [vmem:[%s136_s2 + $0x8] sm:$0xff]  ;;  %s309_s22 = smul.u32 384, %s534_s12 }
  0x44   : > { %s308_s3 = smul.u32 24, %s152_s30  ;;  %v170_v2 = vadd.f32 1.0, %v300_v1  ;;  %v177_v3 = vsub.f32 %v300_v1, %v165_v0  ;;  %v180_v4 = vmul.f32 %v300_v1, %v300_v1  ;;  %v169_v6 = vadd.f32 1.0, %v165_v0  ;;  %s713_s5 = scalar_lea.sflag [#allocation4], %s152_s30 }
  0x45   : > { %s709_s4 = scalar_lea.hbm %s770_s1, %s309_s22  ;;  %p778_p1 = scmp.ne.s32.totalorder %s774_s28, 0 }
  0x46   : > { %402 = vrcp.f32 %v170_v2  ;;  %v178_v5 = vmul.f32 %v177_v3, %v177_v3  ;;  %s154_s9 = scalar_lea.vmem [#allocation5], %s308_s3  ;;  %s548_s12 = smov [#allocation5]  }
  0x47   : > { %304 = vst [vmem:[%s154_s9 + $0x10] sm:$0xff] %v180_v4  ;;  %s210_s16 = sshll.u32 %s154_s9, 4  ;;  %s440_s21 = sshll.u32 %s548_s12, 4  ;;  %s711_s16 = int_to_ptr.vmem [resolvable:$true] %s210_s16  ;;  %s441_s21 = int_to_ptr.vmem [resolvable:$false] %s440_s21 }
  0x48   : > { %302 = vst [vmem:[%s154_s9 + $0x8] sm:$0xff] %v178_v5  ;;  %s436_s15 = scalar_lea.vmem %s711_s16, 384  ;;  %s442_s20 = scalar_lea.vmem %s441_s21, 768 }
  0x49   : > { %p437_p8 = scmp.ne.s32.totalorder %s711_s16, %s436_s15  ;;  %p443_p12 = scmp.lt.s32.totalorder %s711_s16, %s441_s21 }
  0x4a   : > { %p444_p4 = scmp.lt.s32.totalorder %s442_s20, %s436_s15 }
  0x4b   : > { %p438_p3 = pnand %p437_p8, %p778_p1 }
  0x4c   : > { %p445_p9 = por %p444_p4, %p443_p12 }
  0x4d   : > { %p439_p5 = pneg %p438_p3 }
  0x4f   : > { %p446_p11 = pnand %p445_p9, %p439_p5 }
  0x50   : > { %v403_v7 = vpop.eup %402 }
  0x51   : > { %v172_v8 = vmul.f32 %v403_v7, %v169_v6 }
  0x53   : > { %404 = vlog2.f32 %v172_v8 }
  0x5d   : > { %v405_v9 = vpop.eup %404 }
  0x5e   : > { %v174_v10 = vmul.f32 0.6931472, %v405_v9 }
  0x60   : > { %v175_v11 = vand.u32 2147483647, %v174_v10 }
  0x62   : > { %187 = vst [vmem:[%s154_s9] sm:$0xff] %v175_v11 }
  0x63   : > { %449 = shalt.err (!%p446_p11)
}
  0x64   : > { %s450_s23 = scalar_lea.hbm %s709_s4, 384  ;;  %s454_s2 = scalar_lea.hbm %s770_s1, 768 }
  0x65   : > { %p451_p6 = scmp.ne.s32.totalorder %s709_s4, %s450_s23  ;;  %p455_p2 = scmp.lt.u32.totalorder %s709_s4, %s770_s1 }
  0x66   : > { %p456_p7 = scmp.lt.u32.totalorder %s454_s2, %s450_s23  ;;  %p458_p8 = scmp.lt.u32.totalorder %s450_s23, %s709_s4 }
  0x67   : > { %p452_p13 = pnand %p451_p6, %p778_p1 }
  0x68   : > { %p457_p10 = por %p456_p7, %p455_p2 }
  0x69   : > { %p453_p0 = pneg %p452_p13 }
  0x6a   : > { %p459_p3 = por %p458_p8, %p457_p10 }
  0x6c   : > { %p460_p5 = pnand %p459_p3, %p453_p0 }
  0x6e   : > { %463 = shalt.err (!%p460_p5)
}
  0x6f   : > { %s549_s9 = smov 128   ;;  %s550_s22 = smov 8  }
  0x70   : > { %312 = dma.vmem_to_hbm [thread:$0]  (%p778_p1), %s711_s16, 384, %s709_s4, %s713_s5, %s549_s9, %s549_s9, %s550_s22  }
  0x71 PF: > { %s225_s18 = sand.u32 1, %s510_s6   ;;  %p779_p12 = scmp.ne.s32.totalorder %s775_s29, 0 }
  0x72   : > { %p780_p4 = scmp.ge.s32.totalorder %s542_s14, 2  ;;  %s226_s19 = scalar_lea.sflag [#allocation4], %s225_s18 }
  0x74   : > { %p319_p9 = pnand %p780_p4, %p779_p12 }
  0x76   : > { %505 = dma.done.wait (!%p319_p9), %s226_s19, 384  }
  0x77   : > { %507 = vsyncadd (!%p319_p9), %s226_s19, 4294966912  ;;  %s17_s14 = sadd.s32 1, %s542_s14   ;;  %s781_s6 = smov %s514_s7 }
  0x78   : > { %p14_p11 = scmp.ge.s32.totalorder %s17_s14, 4   ;;  %s782_s7 = smov %s518_s8 }
  0x79   : > { %s783_s8 = smov %s633_s26  ;;  %s784_s9 = smov %s526_s10 }
  0x7a   : > { %s785_s10 = smov %s530_s11  ;;  %s786_s11 = smov %s636_s27 }
  0x7b   : > { %s787_s12 = smov %s538_s13  ;;  %s788_s13 = smov %s790_s17 }
  0x7c   :  { %16 = sbr.rel (!%p14_p11) target bundleno = 8 (0x8), region = 76 }
  0x83   :  { %231 = vsyncpa [#allocation3], 1 }
  0x84   :  { %233 = vsyncpa [#allocation3 + $0x1], 1 }
  0x85   :  { %234 = vsyncpa [#allocation4], 1 }
  0x86   :  { %236 = vsyncpa [#allocation4 + $0x1], 1 }

</bundles_post_ra>
